<compile_context>
chip_gen: v6e
topology: v6e:2x2x1
jax: 0.10.0
libtpu: 0.0.40
codegen_flags: <defaults>
</compile_context>

<pallas_src>
import math
import functools

import jax
import jax.numpy as jnp
from jax import lax
from jax.experimental import pallas as pl
from jax.experimental.pallas import tpu as pltpu


# ----------------------------------------------------------------------------
# helpers
# ----------------------------------------------------------------------------

def _row_tile(M, max_tile=256):
    """Largest row tile <= max_tile that divides M (keeps VMEM bounded, enables
    pipelining at real sizes; collapses to a single block for tiny test M)."""
    for t in (max_tile, 128, 64, 32, 16, 8):
        if M >= t and M % t == 0:
            return t
    return M


# ----------------------------------------------------------------------------
# Kernel 1: embedding lookup (one-hot matmul) + positional encoding
# ----------------------------------------------------------------------------
# TODO(synk): for production vocab sizes replace the one-hot matmul with a
# scalar-prefetch row-gather (PrefetchScalarGridSpec + data-dependent index_map).

def _embed_kernel(ids_ref, emb_ref, pe_ref, o_ref):
    ids = ids_ref[...]                                     # (TM, 1) int32
    V = emb_ref.shape[0]
    iota = lax.broadcasted_iota(jnp.int32, (ids.shape[0], V), 1)
    onehot = (iota == ids).astype(jnp.float32)             # (TM, V)
    emb = jnp.dot(onehot, emb_ref[...].astype(jnp.float32),
                  preferred_element_type=jnp.float32)      # (TM, D)
    o_ref[...] = (emb + pe_ref[...].astype(jnp.float32)).astype(o_ref.dtype)


def embed_and_pos_encode(ids, emb_table, pe):
    """ids: (B, T) int32 -> (B, T, D) = embedding[ids] + pe[:T]"""
    B, T = ids.shape
    V, D = emb_table.shape
    M = B * T
    ids2 = ids.reshape(M, 1).astype(jnp.int32)
    pe_tiled = jnp.broadcast_to(pe[None, :T, :], (B, T, D)).reshape(M, D)
    TM = _row_tile(M)
    out = pl.pallas_call(
        _embed_kernel,
        out_shape=jax.ShapeDtypeStruct((M, D), emb_table.dtype),
        grid=(M // TM,),
        in_specs=[
            pl.BlockSpec((TM, 1), lambda i: (i, 0)),
            pl.BlockSpec((V, D), lambda i: (0, 0)),      # table stays VMEM-resident
            pl.BlockSpec((TM, D), lambda i: (i, 0)),
        ],
        out_specs=pl.BlockSpec((TM, D), lambda i: (i, 0)),
        compiler_params=pltpu.CompilerParams(dimension_semantics=("parallel",)),
    )(ids2, emb_table, pe_tiled)
    return out.reshape(B, T, D)


# ----------------------------------------------------------------------------
# Kernel 2: fused attention sub-layer
#   (Q proj + fused K|V proj + multi-head attention + out proj + residual + LN)
# ----------------------------------------------------------------------------

def _mha_block_kernel(xq_ref, xkv_ref, wq_ref, bq_ref, wkv_ref, bkv_ref,
                      wo_ref, bo_ref, g_ref, beta_ref, o_ref,
                      *, num_heads, causal):
    f32 = jnp.float32
    xq = xq_ref[...].astype(f32)                 # (Tq, D) — also the residual
    xkv = xkv_ref[...].astype(f32)               # (Tk, D)
    Tq, D = xq.shape
    Tk = xkv.shape[0]
    dk = D // num_heads
    scale = 1.0 / math.sqrt(dk)

    # Projections (single fused K|V matmul).
    q = jnp.dot(xq, wq_ref[...].astype(f32),
                preferred_element_type=f32) + bq_ref[...].astype(f32)      # (Tq, D)
    kv = jnp.dot(xkv, wkv_ref[...].astype(f32),
                 preferred_element_type=f32) + bkv_ref[...].astype(f32)    # (Tk, 2D)
    k = kv[:, :D]
    v = kv[:, D:]

    if causal:
        qi = lax.broadcasted_iota(jnp.int32, (Tq, Tk), 0)
        ki = lax.broadcasted_iota(jnp.int32, (Tq, Tk), 1)
        allow = ki <= qi                                   # built in-kernel, no mask DMA

    wo = wo_ref[...].astype(f32)                           # (D, D)

    # All heads processed inside one kernel invocation; the output projection is
    # folded into the per-head loop (sum over head row-blocks of wo), so no
    # concat / transpose is needed and the output stays (Tq, D) lane-dense.
    attn = jnp.zeros((Tq, D), f32)
    for h in range(num_heads):
        lo, hi = h * dk, (h + 1) * dk
        qh, kh, vh = q[:, lo:hi], k[:, lo:hi], v[:, lo:hi]
        # Q @ K^T via dot_general contracting last dims (no materialized .T).
        s = lax.dot_general(qh, kh,
                            dimension_numbers=(((1,), (1,)), ((), ())),
                            preferred_element_type=f32) * scale           # (Tq, Tk)
        if causal:
            s = jnp.where(allow, s, jnp.float32(-1e9))
        s_max = jnp.max(s, axis=-1, keepdims=True)
        e = jnp.exp(s - s_max)
        denom = jnp.sum(e, axis=-1, keepdims=True)
        p = e * pl.reciprocal(denom, approx=True)                         # EUP slot
        ctx_h = jnp.dot(p, vh, preferred_element_type=f32)                # (Tq, dk)
        attn = attn + jnp.dot(ctx_h, wo[lo:hi, :], preferred_element_type=f32)

    attn = attn + bo_ref[...].astype(f32)

    # Residual + LayerNorm epilogue (eps = 1e-5, as nn.LayerNorm).
    resid = xq + attn
    mean = jnp.mean(resid, axis=-1, keepdims=True)
    var = jnp.mean((resid - mean) ** 2, axis=-1, keepdims=True)
    normed = (resid - mean) * lax.rsqrt(var + 1e-5)
    o_ref[...] = (normed * g_ref[...].astype(f32)
                  + beta_ref[...].astype(f32)).astype(o_ref.dtype)


def attention_block(p, xq, xkv, gamma, beta, num_heads, causal):
    """Fused MHA sub-layer: LayerNorm(xq + MHA(xq, xkv, xkv))."""
    B, Tq, D = xq.shape
    Tk = xkv.shape[1]
    kernel = functools.partial(_mha_block_kernel, num_heads=num_heads, causal=causal)
    return pl.pallas_call(
        kernel,
        out_shape=jax.ShapeDtypeStruct((B, Tq, D), xq.dtype),
        grid=(B,),
        in_specs=[
            pl.BlockSpec((None, Tq, D), lambda b: (b, 0, 0)),
            pl.BlockSpec((None, Tk, D), lambda b: (b, 0, 0)),
            pl.BlockSpec((D, D), lambda b: (0, 0)),
            pl.BlockSpec((1, D), lambda b: (0, 0)),
            pl.BlockSpec((D, 2 * D), lambda b: (0, 0)),
            pl.BlockSpec((1, 2 * D), lambda b: (0, 0)),
            pl.BlockSpec((D, D), lambda b: (0, 0)),
            pl.BlockSpec((1, D), lambda b: (0, 0)),
            pl.BlockSpec((1, D), lambda b: (0, 0)),
            pl.BlockSpec((1, D), lambda b: (0, 0)),
        ],
        out_specs=pl.BlockSpec((None, Tq, D), lambda b: (b, 0, 0)),
        compiler_params=pltpu.CompilerParams(dimension_semantics=("parallel",)),
    )(xq, xkv,
      p["wq"], p["bq"].reshape(1, -1),
      p["wkv"], p["bkv"].reshape(1, -1),
      p["wo"], p["bo"].reshape(1, -1),
      gamma.reshape(1, -1), beta.reshape(1, -1))


# ----------------------------------------------------------------------------
# Kernel 3: fused FFN (linear -> ReLU -> linear) + residual + LayerNorm
# ----------------------------------------------------------------------------

def _ffn_ln_kernel(x_ref, w1_ref, b1_ref, w2_ref, b2_ref, g_ref, beta_ref, o_ref):
    f32 = jnp.float32
    x = x_ref[...].astype(f32)
    h = jnp.dot(x, w1_ref[...].astype(f32),
                preferred_element_type=f32) + b1_ref[...].astype(f32)
    h = jnp.maximum(h, 0.0)
    y = jnp.dot(h, w2_ref[...].astype(f32),
                preferred_element_type=f32) + b2_ref[...].astype(f32)
    resid = x + y
    mean = jnp.mean(resid, axis=-1, keepdims=True)
    var = jnp.mean((resid - mean) ** 2, axis=-1, keepdims=True)
    normed = (resid - mean) * lax.rsqrt(var + 1e-5)
    o_ref[...] = (normed * g_ref[...].astype(f32)
                  + beta_ref[...].astype(f32)).astype(o_ref.dtype)


def ffn_ln_block(x, w1, b1, w2, b2, gamma, beta):
    """LayerNorm(x + FFN(x)), tiled over rows; weights VMEM-resident."""
    B, T, D = x.shape
    Dff = w1.shape[1]
    M = B * T
    TM = _row_tile(M)
    x2 = x.reshape(M, D)
    out = pl.pallas_call(
        _ffn_ln_kernel,
        out_shape=jax.ShapeDtypeStruct((M, D), x.dtype),
        grid=(M // TM,),
        in_specs=[
            pl.BlockSpec((TM, D), lambda i: (i, 0)),
            pl.BlockSpec((D, Dff), lambda i: (0, 0)),
            pl.BlockSpec((1, Dff), lambda i: (0, 0)),
            pl.BlockSpec((Dff, D), lambda i: (0, 0)),
            pl.BlockSpec((1, D), lambda i: (0, 0)),
            pl.BlockSpec((1, D), lambda i: (0, 0)),
            pl.BlockSpec((1, D), lambda i: (0, 0)),
        ],
        out_specs=pl.BlockSpec((TM, D), lambda i: (i, 0)),
        compiler_params=pltpu.CompilerParams(dimension_semantics=("parallel",)),
    )(x2, w1, b1.reshape(1, -1), w2, b2.reshape(1, -1),
      gamma.reshape(1, -1), beta.reshape(1, -1))
    return out.reshape(B, T, D)


# ----------------------------------------------------------------------------
# Kernel 4: plain linear (final vocab projection), tiled over rows
# ----------------------------------------------------------------------------

def _linear_kernel(x_ref, w_ref, b_ref, o_ref):
    acc = jnp.dot(x_ref[...].astype(jnp.float32), w_ref[...].astype(jnp.float32),
                  preferred_element_type=jnp.float32)
    o_ref[...] = (acc + b_ref[...].astype(jnp.float32)).astype(o_ref.dtype)


def linear(x2d, w, b):
    M, Din = x2d.shape
    Dout = w.shape[1]
    TM = _row_tile(M)
    return pl.pallas_call(
        _linear_kernel,
        out_shape=jax.ShapeDtypeStruct((M, Dout), x2d.dtype),
        grid=(M // TM,),
        in_specs=[
            pl.BlockSpec((TM, Din), lambda i: (i, 0)),
            pl.BlockSpec((Din, Dout), lambda i: (0, 0)),
            pl.BlockSpec((1, Dout), lambda i: (0, 0)),
        ],
        out_specs=pl.BlockSpec((TM, Dout), lambda i: (i, 0)),
        compiler_params=pltpu.CompilerParams(dimension_semantics=("parallel",)),
    )(x2d, w, b.reshape(1, -1))


# ----------------------------------------------------------------------------
# Model-level wiring (pure glue: only reshapes between fused kernels)
# ----------------------------------------------------------------------------

def encoder_layer(p, x, num_heads):
    # src_mask is None in Transformer.forward -> unmasked self-attention.
    x2 = attention_block(p["attn"], x, x, p["norm1_g"], p["norm1_b"],
                         num_heads, causal=False)
    return ffn_ln_block(x2, p["ff_w1"], p["ff_b1"], p["ff_w2"], p["ff_b2"],
                        p["norm2_g"], p["norm2_b"])


def decoder_layer(p, x, enc_out, num_heads):
    x2 = attention_block(p["self_attn"], x, x, p["norm1_g"], p["norm1_b"],
                         num_heads, causal=True)            # causal tgt_mask
    x3 = attention_block(p["cross_attn"], x2, enc_out, p["norm2_g"], p["norm2_b"],
                         num_heads, causal=False)           # src_mask is None
    return ffn_ln_block(x3, p["ff_w1"], p["ff_b1"], p["ff_w2"], p["ff_b2"],
                        p["norm3_g"], p["norm3_b"])


def transformer_forward(params, src_ids, tgt_ids, num_heads):
    D = params["emb"].shape[1]
    src = embed_and_pos_encode(src_ids, params["emb"], params["pe"])
    tgt = embed_and_pos_encode(tgt_ids, params["emb"], params["pe"])
    for lp in params["enc_layers"]:
        src = encoder_layer(lp, src, num_heads)
    for lp in params["dec_layers"]:
        tgt = decoder_layer(lp, tgt, src, num_heads)
    B, T, _ = tgt.shape
    logits = linear(tgt.reshape(B * T, D), params["fc_w"], params["fc_b"])
    return logits.reshape(B, T, -1)


# ----------------------------------------------------------------------------
# Deterministic parameter / buffer construction
# ----------------------------------------------------------------------------

def make_positional_encoding(max_len, d_model):
    pos = jnp.arange(max_len, dtype=jnp.float32)[:, None]
    div = jnp.exp(jnp.arange(0, d_model, 2, dtype=jnp.float32)
                  * (-math.log(10000.0) / d_model))
    ang = pos * div[None, :]
    pe = jnp.zeros((max_len, d_model), jnp.float32)
    pe = pe.at[:, 0::2].set(jnp.sin(ang))
    pe = pe.at[:, 1::2].set(jnp.cos(ang))
    return pe


def init_attn_params(key, d_model):
    ks = jax.random.split(key, 8)
    s = 1.0 / math.sqrt(d_model)
    u = lambda k, shape: jax.random.uniform(k, shape, jnp.float32, -s, s)
    wk = u(ks[2], (d_model, d_model))
    wv = u(ks[4], (d_model, d_model))
    bk = u(ks[3], (d_model,))
    bv = u(ks[5], (d_model,))
    return {
        "wq": u(ks[0], (d_model, d_model)),
        "bq": u(ks[1], (d_model,)),
        "wkv": jnp.concatenate([wk, wv], axis=1),   # fused K|V projection weight
        "bkv": jnp.concatenate([bk, bv], axis=0),
        "wo": u(ks[6], (d_model, d_model)),
        "bo": u(ks[7], (d_model,)),
    }


def _init_ffn_ln(key, d_model, d_ff, n_norms):
    k1, k2, k3, k4 = jax.random.split(key, 4)
    s1 = 1.0 / math.sqrt(d_model)
    s2 = 1.0 / math.sqrt(d_ff)
    p = {
        "ff_w1": jax.random.uniform(k1, (d_model, d_ff), jnp.float32, -s1, s1),
        "ff_b1": jax.random.uniform(k2, (d_ff,), jnp.float32, -s1, s1),
        "ff_w2": jax.random.uniform(k3, (d_ff, d_model), jnp.float32, -s2, s2),
        "ff_b2": jax.random.uniform(k4, (d_model,), jnp.float32, -s2, s2),
    }
    for n in range(1, n_norms + 1):
        p[f"norm{n}_g"] = jnp.ones((d_model,), jnp.float32)
        p[f"norm{n}_b"] = jnp.zeros((d_model,), jnp.float32)
    return p


def init_encoder_layer(key, d_model, d_ff):
    k_attn, k_ff = jax.random.split(key, 2)
    p = {"attn": init_attn_params(k_attn, d_model)}
    p.update(_init_ffn_ln(k_ff, d_model, d_ff, n_norms=2))
    return p


def init_decoder_layer(key, d_model, d_ff):
    k_sa, k_ca, k_ff = jax.random.split(key, 3)
    p = {"self_attn": init_attn_params(k_sa, d_model),
         "cross_attn": init_attn_params(k_ca, d_model)}
    p.update(_init_ffn_ln(k_ff, d_model, d_ff, n_norms=3))
    return p


def init_transformer(key, vocab_size, d_model, num_heads, num_layers, d_ff, max_len):
    keys = jax.random.split(key, 3 + 2 * num_layers)
    s = 1.0 / math.sqrt(d_model)
    return {
        "emb": jax.random.normal(keys[0], (vocab_size, d_model), jnp.float32),
        "pe": make_positional_encoding(max_len, d_model),
        "fc_w": jax.random.uniform(keys[1], (d_model, vocab_size), jnp.float32, -s, s),
        "fc_b": jax.random.uniform(keys[2], (vocab_size,), jnp.float32, -s, s),
        "enc_layers": [init_encoder_layer(keys[3 + i], d_model, d_ff)
                       for i in range(num_layers)],
        "dec_layers": [init_decoder_layer(keys[3 + num_layers + i], d_model, d_ff)
                       for i in range(num_layers)],
    }


if __name__ == "__main__":
    VOCAB = 64
    D_MODEL = 32
    NUM_HEADS = 4
    NUM_LAYERS = 2
    D_FF = 64
    B = 2
    T_SRC = 8
    T_TGT = 8

    root = jax.random.PRNGKey(0)
    k_param, k_src, k_tgt = jax.random.split(root, 3)

    params = init_transformer(k_param, VOCAB, D_MODEL, NUM_HEADS, NUM_LAYERS, D_FF,
                              max_len=max(T_SRC, T_TGT))
    src_ids = jax.random.randint(k_src, (B, T_SRC), 0, VOCAB)
    tgt_ids = jax.random.randint(k_tgt, (B, T_TGT), 0, VOCAB)

    logits = transformer_forward(params, src_ids, tgt_ids, NUM_HEADS)
    logits = jax.block_until_ready(logits)
    assert logits.shape == (B, T_TGT, VOCAB)
    print("KERNEL_OK")
</pallas_src>

<mosaic_0001>
module attributes {stable_mosaic.version = 11 : i64} {
  func.func @_embed_kernel(%arg0: i32, %arg1: memref<16x1xi32, #tpu.memory_space<vmem>>, %arg2: memref<64x32xf32, #tpu.memory_space<vmem>>, %arg3: memref<16x32xf32, #tpu.memory_space<vmem>>, %arg4: memref<16x32xf32, #tpu.memory_space<vmem>>) attributes {dimension_semantics = [#tpu.dimension_semantics<parallel>], iteration_bounds = array<i64: 1>, scalar_prefetch = 0 : i64, scratch_operands = 0 : i64, tpu.core_type = #tpu.core_type<tc>, window_params = [{transform_indices = @transform_0, window_bounds = array<i64: 16, 1>}, {pipeline_mode = #tpu.pipeline_mode<synchronous>, transform_indices = @transform_1, window_bounds = array<i64: 64, 32>}, {transform_indices = @transform_2, window_bounds = array<i64: 16, 32>}, {transform_indices = @transform_3, window_bounds = array<i64: 16, 32>}]} {
    %c0 = arith.constant 0 : index
    %c0_0 = arith.constant 0 : index
    %0 = vector.load %arg1[%c0, %c0_0] : memref<16x1xi32, #tpu.memory_space<vmem>>, vector<16x1xi32>
    %1 = tpu.iota {dimensions = array<i32: 1>} : vector<16x64xi32>
    %2 = vector.broadcast %0 : vector<16x1xi32> to vector<16x64xi32>
    %3 = arith.cmpi eq, %1, %2 : vector<16x64xi32>
    %4 = arith.extui %3 : vector<16x64xi1> to vector<16x64xi32>
    %5 = arith.sitofp %4 : vector<16x64xi32> to vector<16x64xf32>
    %c0_1 = arith.constant 0 : index
    %c0_2 = arith.constant 0 : index
    %6 = vector.load %arg2[%c0_1, %c0_2] : memref<64x32xf32, #tpu.memory_space<vmem>>, vector<64x32xf32>
    %cst = arith.constant dense<0.000000e+00> : vector<16x32xf32>
    %7 = tpu.matmul %5, %6, %cst {dimension_numbers = #tpu.dot_dimension_numbers<[1], [0], [0], [1], [0, 0, 1, 1], [], []>} : vector<16x64xf32>, vector<64x32xf32>, vector<16x32xf32> -> vector<16x32xf32>
    %c0_3 = arith.constant 0 : index
    %c0_4 = arith.constant 0 : index
    %8 = vector.load %arg3[%c0_3, %c0_4] : memref<16x32xf32, #tpu.memory_space<vmem>>, vector<16x32xf32>
    %9 = arith.addf %7, %8 : vector<16x32xf32>
    %c0_5 = arith.constant 0 : index
    %c0_6 = arith.constant 0 : index
    %10 = vector.load %arg4[%c0_5, %c0_6] : memref<16x32xf32, #tpu.memory_space<vmem>>, vector<16x32xf32>
    tpu.vector_store %arg4[%c0_5, %c0_6], %9 {strides = array<i32>} : memref<16x32xf32, #tpu.memory_space<vmem>>, vector<16x32xf32>,
    return
  }
  func.func @transform_0(%arg0: i32) -> (i32, i32) {
    %c0_i32 = arith.constant 0 : i32
    %c0_i32_0 = arith.constant 0 : i32
    return %arg0, %c0_i32 : i32, i32
  }
  func.func @transform_1(%arg0: i32) -> (i32, i32) {
    %c0_i32 = arith.constant 0 : i32
    %c0_i32_0 = arith.constant 0 : i32
    %c0_i32_1 = arith.constant 0 : i32
    return %c0_i32, %c0_i32_0 : i32, i32
  }
  func.func @transform_2(%arg0: i32) -> (i32, i32) {
    %c0_i32 = arith.constant 0 : i32
    %c0_i32_0 = arith.constant 0 : i32
    return %arg0, %c0_i32 : i32, i32
  }
  func.func @transform_3(%arg0: i32) -> (i32, i32) {
    %c0_i32 = arith.constant 0 : i32
    %c0_i32_0 = arith.constant 0 : i32
    return %arg0, %c0_i32 : i32, i32
  }
}

</mosaic_0001>

<bundles_post_ra>
// kernel: tpu_custom_call.1
= control target key start
LH: loop header
LB: loop body
LE: loop exit
PB: predicated region body
PF: predicated region fallthrough
CT: control target
= control target key end

     0   :  { %v203_v2 = vmov 0   ;;  %s267_s0 = inlined_call_operand.vmem [shape: s32[16,1], index: 0, kind: input, shape index: {}]   ;;  %s268_s1 = inlined_call_operand.vmem [shape: f32[64,32], index: 1, kind: input, shape index: {}]   ;;  %s269_s2 = inlined_call_operand.vmem [shape: f32[16,32], index: 2, kind: input, shape index: {}]   ;;  %s270_s3 = inlined_call_operand.hbm [shape: f32[16,32], index: 3, kind: output, shape index: {}]  }
   0x1   :  { %v15_v0 = vld [vmem:[%s267_s0] sm:$0xff]  ;;  %v38_v1 = vld [vmem:[%s268_s1 + $0x38] sm:$0xff]  ;;  %180 = vset.pattern.permute.xlu0 %v203_v2  ;;  %v37_v3 = vld [vmem:[%s268_s1 + $0x30] sm:$0xff] }
   0x2   :  { %156 = vmatprep.subr.mxu0 %v38_v1  ;;  %20 = vperm.xlu0 %180, %v15_v0   ;;  %v36_v4 = vld [vmem:[%s268_s1 + $0x28] sm:$0xff] }
   0x3   :  { %157 = vmatpush3.msra.mxu0 %v38_v1  ;;  %v16_v5 = vld [vmem:[%s267_s0 + $0x8] sm:$0xff] }
   0x4   :  { %158 = vmatprep.subr.mxu0 %v37_v3 }
   0x5   :  { %8 = vsyncpa [#allocation3], 0  ;;  %159 = vmatpush3.msra.mxu0 %v37_v3  ;;  %v35_v6 = vld [vmem:[%s268_s1 + $0x20] sm:$0xff]  ;;  %v34_v7 = vld [vmem:[%s268_s1 + $0x18] sm:$0xff]  ;;  %v17_v11 = vlaneseq  ;;  %vm41_vm0 = vcmask 523264   ;;  %v204_v14 = vmov 0.0  }
   0x6   :  { %160 = vmatprep.subr.mxu0 %v36_v4  ;;  %23 = vperm.xlu0 %180, %v16_v5   ;;  %v33_v8 = vld [vmem:[%s268_s1 + $0x10] sm:$0xff]  ;;  %v32_v9 = vld [vmem:[%s268_s1 + $0x8] sm:$0xff]  ;;  %v31_v10 = vld [vmem:[%s268_s1] sm:$0xff]  ;;  %s205_s1 = smov [#allocation2]   ;;  %vm123_vm3 = vcmask 261120  }
   0x7   :  { %161 = vmatpush3.msra.mxu0 %v36_v4  ;;  %v18_v12 = vand.u32 127, %v17_v11  ;;  %v40_v18 = vld [vmem:[%s269_s2 + $0x8] sm:$0xff]  ;;  %s131_s6 = sshll.u32 %s205_s1, 4  ;;  %v39_v20 = vld [vmem:[%s269_s2] sm:$0xff]  ;;  %s132_s6 = int_to_ptr.vmem [resolvable:$true] %s131_s6 }
   0x8   :  { %162 = vmatprep.subr.mxu0 %v35_v6  ;;  %s181_s9 = scalar_lea.vmem %s132_s6, 256  ;;  %p186_p1 = scmp.lt.s32.totalorder %s132_s6, %s132_s6 }
   0x9   :  { %163 = vmatpush3.msra.mxu0 %v35_v6  ;;  %p182_p0 = scmp.ne.s32.totalorder %s132_s6, %s181_s9  ;;  %p187_p2 = scmp.lt.s32.totalorder %s181_s9, %s181_s9 }
   0xa   :  { %164 = vmatprep.subr.mxu0 %v34_v7 }
   0xb   :  { %165 = vmatpush3.msra.mxu0 %v34_v7  ;;  %p188_p3 = por %p187_p2, %p186_p1 }
   0xc   :  { %166 = vmatprep.subr.mxu0 %v33_v8 }
   0xd   :  { %167 = vmatpush3.msra.mxu0 %v33_v8  ;;  %p189_p4 = pnand %p188_p3, %p182_p0 }
   0xe   :  { %168 = vmatprep.subr.mxu0 %v32_v9 }
   0xf   :  { %169 = vmatpush3.msra.mxu0 %v32_v9 }
  0x10   :  { %170 = vmatprep.subr.mxu0 %v31_v10 }
  0x11   :  { %171 = vmatpush3.msra.mxu0 %v31_v10 }
  0x7d   :  { %v21_v13 = vpop.permute.xlu0 %20 }
  0x7e   :  { %vm25_vm1 = vcmp.eq.s32.totalorder %v18_v12, %v21_v13 }
  0x7f   :  { %v142_v15 = vsel %vm25_vm1, 1.0, %v204_v14 }
  0x80   :  { %172 = vmatprep.mubr.msk.f32.mxu0 %vm41_vm0, %v142_v15 }
  0x81   :  { %v24_v16 = vpop.permute.xlu0 %23 }
  0x82   :  { %vm26_vm2 = vcmp.eq.s32.totalorder %v18_v12, %v24_v16 }
  0x83   :  { %v143_v17 = vsel %vm26_vm2, 1.0, %v204_v14 }
  0x84   :  { %173 = vmatmul.mubr.msk.f32.vlgmr.msra.gmra.mxu0 %vm41_vm0, %v143_v17 }
 0x144   :  { %v174_v19 = vpop.f32.mrf.mxu0 }
 0x145   :  { %v120_v21 = vadd.f32 %v174_v19, %v40_v18 }
 0x146   :  { %v114_v22 = vpop.f32.mrf.mxu0 }
 0x147   :  { %125 = vst.msk [vmem:[#allocation2 + $0x8] sm:$0xff] %vm123_vm3, %v120_v21  ;;  %v115_v23 = vadd.f32 %v114_v22, %v39_v20 }
 0x149   :  { %124 = vst.msk [vmem:[#allocation2] sm:$0xff] %vm123_vm3, %v115_v23 }
 0x14a   :  { %192 = shalt.err (!%p189_p4)
}
 0x14b   :  { %s206_s10 = smov 128   ;;  %s207_s11 = smov 8  }
 0x14c   :  { %137 = dma.vmem_to_hbm [thread:$0]  %s132_s6, 256, %s270_s3, [#allocation3], %s206_s10, %s206_s10, %s207_s11  }
 0x14d   :  { %201 = dma.done.wait [#allocation3], 256  }
 0x14e   :  { %202 = vsyncadd [#allocation3], 4294967040 }
 0x14f   :  { %141 = vsyncpa [#allocation3], 1 }

</bundles_post_ra>
